<compile_context>
chip_gen: v7x
topology: tpu7x:2x2x1
jax: 0.10.0
libtpu: 0.0.40
codegen_flags: <defaults>
</compile_context>

<pallas_src>
import math
from functools import partial

import jax
import jax.numpy as jnp
from jax.experimental import pallas as pl
from jax.experimental.pallas import tpu as pltpu


def _res_block_kernel(x_ref, g_ref, beta_ref, w1_ref, b1_ref, w2_ref, b2_ref,
                      o_ref, *, eps):
    # Matmul operand dtype is chosen explicitly by the wrapper (compute_dtype).
    mm_dtype = w1_ref.dtype

    x = x_ref[...].astype(jnp.float32)
    inv_c = 1.0 / x.shape[-1]

    # --- LayerNorm (two-pass stats, matches the reference formulation) ------
    mean = jnp.sum(x, axis=-1, keepdims=True) * inv_c
    xc = x - mean
    var = jnp.sum(xc * xc, axis=-1, keepdims=True) * inv_c
    # Fused affine: xn = xc * (gamma * rsqrt(var+eps)) + beta
    scale = g_ref[...].astype(jnp.float32) * jax.lax.rsqrt(var + eps)
    xn = xc * scale + beta_ref[...].astype(jnp.float32)

    # --- proj: Linear -> GELU (exact erf, nn.GELU() default) -> Linear ------
    # MXU runs in mm_dtype (bf16 by default), accumulates in f32.
    h = jnp.dot(xn.astype(mm_dtype), w1_ref[...],
                preferred_element_type=jnp.float32)
    h = h + b1_ref[...].astype(jnp.float32)
    # TODO(synk): switch to tanh-approx GELU (EUP slot) only if a bundle dump
    # shows the VALU erf polynomial co-critical with the DMA step.
    h = 0.5 * h * (1.0 + jax.lax.erf(h * (1.0 / math.sqrt(2.0))))
    y = jnp.dot(h.astype(mm_dtype), w2_ref[...],
                preferred_element_type=jnp.float32)
    y = y + b2_ref[...].astype(jnp.float32)

    # --- residual on the normalized input -----------------------------------
    o_ref[...] = (xn + y).astype(o_ref.dtype)


def _round_up(x, m):
    return ((x + m - 1) // m) * m


def _vmem_capacity_bytes():
    """Physical VMEM of the current TPU generation (conservative fallback)."""
    try:
        info = pltpu.get_tpu_info()
        cap = getattr(info, "vmem_capacity_bytes", None)
        if cap:
            return int(cap)
    except Exception:
        pass
    return 64 * 1024 * 1024   # v7x per-core size: safe lower bound everywhere


def _pick_tm(tokens, C, x_itemsize, w_itemsize, vmem_budget):
    """Largest MXU-friendly token tile whose working set fits the VMEM budget."""
    cap = max(8, _round_up(tokens, 8))
    for tm in (4096, 2048, 1024, 512, 256, 128, 64, 32, 16, 8):
        est = (2 * 2 * tm * C * x_itemsize      # x in / out tiles, double-buffered
               + 2 * 2 * C * C * w_itemsize     # w1, w2 (double-buffer accounting)
               + 5 * tm * C * 4)                # f32 intermediates (xc, xn, h, y, ...)
        if est <= vmem_budget:
            return min(tm, cap)
    return min(8, cap)


def simple_res_block(x, gamma, beta, w1, b1, w2, b2, *, eps=1e-5, tm=None,
                     compute_dtype=jnp.bfloat16):
    """x: (..., C) channels-last. Returns same shape/dtype.

    compute_dtype: MXU operand dtype (default bf16 with f32 accumulation).
    Pass jnp.float32 for full-precision matmuls.
    Passing bf16 activations (x) halves the activation HBM traffic of this
    memory-bound kernel; output dtype always matches the input dtype.
    """
    lead = x.shape[:-1]
    C = x.shape[-1]
    tokens = int(math.prod(lead)) if lead else 1
    x2d = x.reshape(tokens, C)

    compute_dtype = jnp.dtype(compute_dtype)
    w1c = w1.astype(compute_dtype)
    w2c = w2.astype(compute_dtype)

    x_item = x.dtype.itemsize
    w_item = compute_dtype.itemsize

    # Generation-aware VMEM sizing (40% budget for tiles, 60% scoped limit).
    vmem_cap = _vmem_capacity_bytes()
    vmem_budget = int(0.40 * vmem_cap)
    vmem_limit = int(0.60 * vmem_cap)

    # TODO(synk): for very large C (C*C weights near the budget) add an
    # output-channel grid axis + K-reduction axis with an f32 accumulator, and
    # single-buffer the grid-invariant weights (pipeline_mode=pl.Buffered(1)),
    # instead of keeping both full weights resident.
    if tm is None:
        tm = _pick_tm(tokens, C, x_item, w_item, vmem_budget)
    tm = max(8, _round_up(min(tm, _round_up(tokens, 8)), 8))
    # Keep >= 2 grid steps so both v7x TensorCores get work (no-op on v5e/v6e).
    tm = min(tm, max(8, _round_up(pl.cdiv(tokens, 2), 8)))

    # No padding: partial last tile is handled by Pallas (OOB writes masked;
    # all ops in the kernel are row-wise so garbage tail rows stay isolated).
    grid = (pl.cdiv(tokens, tm),)

    # Present vectors as (1, C) rows so all refs are >= 2-D.
    gamma2 = gamma.reshape(1, C)
    beta2 = beta.reshape(1, C)
    b1_2 = b1.reshape(1, C)
    b2_2 = b2.reshape(1, C)

    cost = pl.CostEstimate(
        flops=4 * tokens * C * C + 12 * tokens * C,      # 2 matmuls + LN/GELU
        transcendentals=tokens * C,                      # erf per element
        bytes_accessed=(2 * tokens * C * x_item          # x in + out
                        + 2 * C * C * w_item             # w1, w2
                        + 4 * C * 4),                    # gamma/beta/b1/b2
    )

    out2d = pl.pallas_call(
        partial(_res_block_kernel, eps=eps),
        out_shape=jax.ShapeDtypeStruct((tokens, C), x.dtype),
        grid_spec=pltpu.PrefetchScalarGridSpec(
            num_scalar_prefetch=0,
            grid=grid,
            in_specs=[
                pl.BlockSpec((tm, C), lambda i: (i, 0)),   # x tile
                pl.BlockSpec((1, C), lambda i: (0, 0)),    # ln gamma
                pl.BlockSpec((1, C), lambda i: (0, 0)),    # ln beta
                pl.BlockSpec((C, C), lambda i: (0, 0)),    # w1 (in, out)
                pl.BlockSpec((1, C), lambda i: (0, 0)),    # b1
                pl.BlockSpec((C, C), lambda i: (0, 0)),    # w2 (in, out)
                pl.BlockSpec((1, C), lambda i: (0, 0)),    # b2
            ],
            out_specs=pl.BlockSpec((tm, C), lambda i: (i, 0)),
        ),
        compiler_params=pltpu.CompilerParams(
            dimension_semantics=("parallel",),
            vmem_limit_bytes=vmem_limit,
        ),
        cost_estimate=cost,
    )(x2d, gamma2, beta2, w1c, b1_2, w2c, b2_2)

    return out2d.reshape(*lead, C)


def _reference(x, gamma, beta, w1, b1, w2, b2, eps=1e-5,
               compute_dtype=jnp.float32):
    xf = x.astype(jnp.float32)
    mean = jnp.mean(xf, axis=-1, keepdims=True)
    var = jnp.mean((xf - mean) ** 2, axis=-1, keepdims=True)
    xn = (xf - mean) / jnp.sqrt(var + eps) * gamma + beta
    h = jnp.dot(xn.astype(compute_dtype), w1.astype(compute_dtype),
                preferred_element_type=jnp.float32) + b1
    h = 0.5 * h * (1.0 + jax.lax.erf(h / jnp.sqrt(2.0)))
    y = jnp.dot(h.astype(compute_dtype), w2.astype(compute_dtype),
                preferred_element_type=jnp.float32) + b2
    return (xn + y).astype(x.dtype)


if __name__ == "__main__":
    # Small shapes consistent with the module: channels=128 (lane-dense),
    # batch=2, seq=16  ->  32 tokens (tiled with a >=2-step grid inside).
    B, S, C = 2, 16, 128

    key = jax.random.PRNGKey(0)
    kx, kg, kbt, k1, k2, kb1, kb2 = jax.random.split(key, 7)

    x = jax.random.normal(kx, (B, S, C), dtype=jnp.float32)

    # Deterministic parameter init (synthetic; mirrors module shapes).
    gamma = 1.0 + 0.1 * jax.random.normal(kg, (C,), dtype=jnp.float32)   # LN weight
    beta = 0.1 * jax.random.normal(kbt, (C,), dtype=jnp.float32)         # LN bias
    bound = 1.0 / math.sqrt(C)
    w1 = jax.random.uniform(k1, (C, C), minval=-bound, maxval=bound, dtype=jnp.float32)
    b1 = jax.random.uniform(kb1, (C,), minval=-bound, maxval=bound, dtype=jnp.float32)
    w2 = jax.random.uniform(k2, (C, C), minval=-bound, maxval=bound, dtype=jnp.float32)
    b2 = jax.random.uniform(kb2, (C,), minval=-bound, maxval=bound, dtype=jnp.float32)

    # --- full-precision path (exact module semantics) ------------------------
    out_f32 = simple_res_block(x, gamma, beta, w1, b1, w2, b2,
                               compute_dtype=jnp.float32)
    out_f32 = jax.block_until_ready(out_f32)
    ref_f32 = _reference(x, gamma, beta, w1, b1, w2, b2,
                         compute_dtype=jnp.float32)
    assert out_f32.shape == x.shape and out_f32.dtype == x.dtype
    assert jnp.allclose(out_f32, ref_f32, atol=1e-4, rtol=1e-4), \
        "f32 path mismatch vs reference"

    # --- default bf16-MXU path (f32 accumulation) ----------------------------
    out_bf = simple_res_block(x, gamma, beta, w1, b1, w2, b2)   # compute_dtype=bf16
    out_bf = jax.block_until_ready(out_bf)
    ref_bf = _reference(x, gamma, beta, w1, b1, w2, b2,
                        compute_dtype=jnp.bfloat16)
    assert out_bf.shape == x.shape and out_bf.dtype == x.dtype
    assert jnp.allclose(out_bf, ref_bf, atol=2e-3, rtol=2e-3), \
        "bf16 path mismatch vs bf16 reference"
    assert jnp.allclose(out_bf, ref_f32, atol=5e-2, rtol=5e-2), \
        "bf16 path drifted too far from exact f32 reference"

    print("KERNEL_OK")
</pallas_src>

<mosaic_0001>
module attributes {stable_mosaic.version = 11 : i64} {
  func.func @_res_block_kernel(%arg0: i32, %arg1: memref<16x128xf32, #tpu.memory_space<vmem>>, %arg2: memref<1x128xf32, #tpu.memory_space<vmem>>, %arg3: memref<1x128xf32, #tpu.memory_space<vmem>>, %arg4: memref<128x128xf32, #tpu.memory_space<vmem>>, %arg5: memref<1x128xf32, #tpu.memory_space<vmem>>, %arg6: memref<128x128xf32, #tpu.memory_space<vmem>>, %arg7: memref<1x128xf32, #tpu.memory_space<vmem>>, %arg8: memref<16x128xf32, #tpu.memory_space<vmem>>) attributes {dimension_semantics = [#tpu.dimension_semantics<parallel>], iteration_bounds = array<i64: 2>, scalar_prefetch = 0 : i64, scratch_operands = 0 : i64, tpu.core_type = #tpu.core_type<tc>, window_params = [{transform_indices = @transform_0, window_bounds = array<i64: 16, 128>}, {pipeline_mode = #tpu.pipeline_mode<synchronous>, transform_indices = @transform_1, window_bounds = array<i64: 1, 128>}, {pipeline_mode = #tpu.pipeline_mode<synchronous>, transform_indices = @transform_2, window_bounds = array<i64: 1, 128>}, {pipeline_mode = #tpu.pipeline_mode<synchronous>, transform_indices = @transform_3, window_bounds = array<i64: 128, 128>}, {pipeline_mode = #tpu.pipeline_mode<synchronous>, transform_indices = @transform_4, window_bounds = array<i64: 1, 128>}, {pipeline_mode = #tpu.pipeline_mode<synchronous>, transform_indices = @transform_5, window_bounds = array<i64: 128, 128>}, {pipeline_mode = #tpu.pipeline_mode<synchronous>, transform_indices = @transform_6, window_bounds = array<i64: 1, 128>}, {transform_indices = @transform_7, window_bounds = array<i64: 16, 128>}]} {
    %c0 = arith.constant 0 : index
    %c0_0 = arith.constant 0 : index
    %0 = vector.load %arg1[%c0, %c0_0] : memref<16x128xf32, #tpu.memory_space<vmem>>, vector<16x128xf32>
    %cst = arith.constant dense<0.000000e+00> : vector<16xf32>
    %1 = vector.multi_reduction <add>, %0, %cst [1] : vector<16x128xf32> to vector<16xf32>
    %2 = vector.shape_cast %1 : vector<16xf32> to vector<16x1xf32>
    %cst_1 = arith.constant 7.812500e-03 : f32
    %3 = vector.broadcast %cst_1 : f32 to vector<16x1xf32>
    %4 = arith.mulf %2, %3 : vector<16x1xf32>
    %5 = vector.broadcast %4 : vector<16x1xf32> to vector<16x128xf32>
    %6 = arith.subf %0, %5 : vector<16x128xf32>
    %7 = arith.mulf %6, %6 : vector<16x128xf32>
    %cst_2 = arith.constant dense<0.000000e+00> : vector<16xf32>
    %8 = vector.multi_reduction <add>, %7, %cst_2 [1] : vector<16x128xf32> to vector<16xf32>
    %9 = vector.shape_cast %8 : vector<16xf32> to vector<16x1xf32>
    %cst_3 = arith.constant 7.812500e-03 : f32
    %10 = vector.broadcast %cst_3 : f32 to vector<16x1xf32>
    %11 = arith.mulf %9, %10 : vector<16x1xf32>
    %c0_4 = arith.constant 0 : index
    %c0_5 = arith.constant 0 : index
    %12 = vector.load %arg2[%c0_4, %c0_5] : memref<1x128xf32, #tpu.memory_space<vmem>>, vector<1x128xf32>
    %cst_6 = arith.constant 9.99999974E-6 : f32
    %13 = vector.broadcast %cst_6 : f32 to vector<16x1xf32>
    %14 = arith.addf %11, %13 : vector<16x1xf32>
    %15 = math.rsqrt %14 : vector<16x1xf32>
    %16 = vector.broadcast %12 : vector<1x128xf32> to vector<16x128xf32>
    %17 = vector.broadcast %15 : vector<16x1xf32> to vector<16x128xf32>
    %18 = arith.mulf %16, %17 : vector<16x128xf32>
    %19 = arith.mulf %6, %18 : vector<16x128xf32>
    %c0_7 = arith.constant 0 : index
    %c0_8 = arith.constant 0 : index
    %20 = vector.load %arg3[%c0_7, %c0_8] : memref<1x128xf32, #tpu.memory_space<vmem>>, vector<1x128xf32>
    %21 = vector.broadcast %20 : vector<1x128xf32> to vector<16x128xf32>
    %22 = arith.addf %19, %21 : vector<16x128xf32>
    %c0_9 = arith.constant 0 : index
    %c0_10 = arith.constant 0 : index
    %23 = vector.load %arg4[%c0_9, %c0_10] : memref<128x128xf32, #tpu.memory_space<vmem>>, vector<128x128xf32>
    %cst_11 = arith.constant dense<0.000000e+00> : vector<16x128xf32>
    %24 = tpu.matmul %22, %23, %cst_11 {dimension_numbers = #tpu.dot_dimension_numbers<[1], [0], [0], [1], [0, 0, 1, 1], [], []>} : vector<16x128xf32>, vector<128x128xf32>, vector<16x128xf32> -> vector<16x128xf32>
    %c0_12 = arith.constant 0 : index
    %c0_13 = arith.constant 0 : index
    %25 = vector.load %arg5[%c0_12, %c0_13] : memref<1x128xf32, #tpu.memory_space<vmem>>, vector<1x128xf32>
    %26 = vector.broadcast %25 : vector<1x128xf32> to vector<16x128xf32>
    %27 = arith.addf %24, %26 : vector<16x128xf32>
    %cst_14 = arith.constant 5.000000e-01 : f32
    %28 = vector.broadcast %cst_14 : f32 to vector<16x128xf32>
    %29 = arith.mulf %28, %27 : vector<16x128xf32>
    %cst_15 = arith.constant 0.707106769 : f32
    %30 = vector.broadcast %cst_15 : f32 to vector<16x128xf32>
    %31 = arith.mulf %27, %30 : vector<16x128xf32>
    %32 = math.erf %31 : vector<16x128xf32>
    %cst_16 = arith.constant 1.000000e+00 : f32
    %33 = vector.broadcast %cst_16 : f32 to vector<16x128xf32>
    %34 = arith.addf %33, %32 : vector<16x128xf32>
    %35 = arith.mulf %29, %34 : vector<16x128xf32>
    %c0_17 = arith.constant 0 : index
    %c0_18 = arith.constant 0 : index
    %36 = vector.load %arg6[%c0_17, %c0_18] : memref<128x128xf32, #tpu.memory_space<vmem>>, vector<128x128xf32>
    %cst_19 = arith.constant dense<0.000000e+00> : vector<16x128xf32>
    %37 = tpu.matmul %35, %36, %cst_19 {dimension_numbers = #tpu.dot_dimension_numbers<[1], [0], [0], [1], [0, 0, 1, 1], [], []>} : vector<16x128xf32>, vector<128x128xf32>, vector<16x128xf32> -> vector<16x128xf32>
    %c0_20 = arith.constant 0 : index
    %c0_21 = arith.constant 0 : index
    %38 = vector.load %arg7[%c0_20, %c0_21] : memref<1x128xf32, #tpu.memory_space<vmem>>, vector<1x128xf32>
    %39 = vector.broadcast %38 : vector<1x128xf32> to vector<16x128xf32>
    %40 = arith.addf %37, %39 : vector<16x128xf32>
    %41 = arith.addf %22, %40 : vector<16x128xf32>
    %c0_22 = arith.constant 0 : index
    %c0_23 = arith.constant 0 : index
    %42 = vector.load %arg8[%c0_22, %c0_23] : memref<16x128xf32, #tpu.memory_space<vmem>>, vector<16x128xf32>
    tpu.vector_store %arg8[%c0_22, %c0_23], %41 {strides = array<i32>} : memref<16x128xf32, #tpu.memory_space<vmem>>, vector<16x128xf32>,
    return
  }
  func.func @transform_0(%arg0: i32) -> (i32, i32) {
    %c0_i32 = arith.constant 0 : i32
    %c0_i32_0 = arith.constant 0 : i32
    return %arg0, %c0_i32 : i32, i32
  }
  func.func @transform_1(%arg0: i32) -> (i32, i32) {
    %c0_i32 = arith.constant 0 : i32
    %c0_i32_0 = arith.constant 0 : i32
    %c0_i32_1 = arith.constant 0 : i32
    return %c0_i32, %c0_i32_0 : i32, i32
  }
  func.func @transform_2(%arg0: i32) -> (i32, i32) {
    %c0_i32 = arith.constant 0 : i32
    %c0_i32_0 = arith.constant 0 : i32
    %c0_i32_1 = arith.constant 0 : i32
    return %c0_i32, %c0_i32_0 : i32, i32
  }
  func.func @transform_3(%arg0: i32) -> (i32, i32) {
    %c0_i32 = arith.constant 0 : i32
    %c0_i32_0 = arith.constant 0 : i32
    %c0_i32_1 = arith.constant 0 : i32
    return %c0_i32, %c0_i32_0 : i32, i32
  }
  func.func @transform_4(%arg0: i32) -> (i32, i32) {
    %c0_i32 = arith.constant 0 : i32
    %c0_i32_0 = arith.constant 0 : i32
    %c0_i32_1 = arith.constant 0 : i32
    return %c0_i32, %c0_i32_0 : i32, i32
  }
  func.func @transform_5(%arg0: i32) -> (i32, i32) {
    %c0_i32 = arith.constant 0 : i32
    %c0_i32_0 = arith.constant 0 : i32
    %c0_i32_1 = arith.constant 0 : i32
    return %c0_i32, %c0_i32_0 : i32, i32
  }
  func.func @transform_6(%arg0: i32) -> (i32, i32) {
    %c0_i32 = arith.constant 0 : i32
    %c0_i32_0 = arith.constant 0 : i32
    %c0_i32_1 = arith.constant 0 : i32
    return %c0_i32, %c0_i32_0 : i32, i32
  }
  func.func @transform_7(%arg0: i32) -> (i32, i32) {
    %c0_i32 = arith.constant 0 : i32
    %c0_i32_0 = arith.constant 0 : i32
    return %arg0, %c0_i32 : i32, i32
  }
}

</mosaic_0001>

<bundles_post_ra>
// kernel: tpu_custom_call.1
= control target key start
LH: loop header
LB: loop body
LE: loop exit
PB: predicated region body
PF: predicated region fallthrough
CT: control target
= control target key end

     0   :  { %12 = vsyncpa [#allocation3], 0  ;;  %s1434_s0 = inlined_call_operand.hbm [shape: f32[32,128], index: 0, kind: input, shape index: {}]   ;;  %s1435_s1 = inlined_call_operand.vmem [shape: f32[1,128], index: 1, kind: input, shape index: {}]   ;;  %s1436_s2 = inlined_call_operand.vmem [shape: f32[1,128], index: 2, kind: input, shape index: {}]   ;;  %s1437_s3 = inlined_call_operand.hbm [shape: f32[128,128], index: 3, kind: input, shape index: {}]   ;;  %s1438_s4 = inlined_call_operand.vmem [shape: f32[1,128], index: 4, kind: input, shape index: {}]   ;;  %s1439_s5 = inlined_call_operand.hbm [shape: f32[128,128], index: 5, kind: input, shape index: {}]   ;;  %s1440_s6 = inlined_call_operand.vmem [shape: f32[1,128], index: 6, kind: input, shape index: {}]   ;;  %s1441_s7 = inlined_call_operand.hbm [shape: f32[32,128], index: 7, kind: output, shape index: {}]  }
   0x1   :  { %14 = vsyncpa [#allocation3 + $0x1], 0 }
   0x2   :  { %15 = vsyncpa [#allocation6], 0 }
   0x3   :  { %16 = vsyncpa [#allocation4], 0 }
   0x4   :  { %18 = vsyncpa [#allocation4 + $0x1], 0  ;;  %s1165_s24 = smov 0   ;;  %s1167_s25 = smov 0  }
   0x5   :  { %s1169_s26 = smov 0   ;;  %s1171_s27 = smov 0  }
   0x6 LB: > { %s1186_s28 = sadd.s32 4294967295, %s1115_s27   ;;  %s686_s29 = sadd.s32 4294967294, %s1115_s27   ;;  %s1115_s27 = sphi %s1171_s27, %s1463_s27   ;;  %s1111_s26 = sphi %s1169_s26, %s1462_s26   ;;  %s1107_s25 = sphi %s1167_s25, %s1461_s25   ;;  %s1103_s24 = sphi %s1165_s24, %s1460_s24  }
   0x7   : > { %p44_p0 = scmp.ne.s32.totalorder %s1107_s25, %s1103_s24  ;;  %p1442_p1 = scmp.eq.s32.totalorder %s1186_s28, 0 }
   0x8   : > { %p200_p3 = scmp.eq.s32.totalorder %s686_s29, 1  ;;  %p687_p5 = scmp.ge.s32.totalorder %s1115_s27, 1 }
   0x9   : > { %p1195_p4 = por %p1442_p1, %p44_p0  ;;  %p207_p7 = scmp.lt.s32.totalorder %s1115_s27, 3 }
   0xa   : > { %p1200_p6 = por %p200_p3, %p44_p0  ;;  %s1117_s10 = smov [#allocation5]  }
   0xb   : > { %s1446_s30 = scalar_select %p1195_p4, 1, 0 }
   0xc   : > { %s1447_s8 = scalar_select %p1200_p6, 1, 0 }
   0xd   : > { %p1205_p8 = pnand %p687_p5, %p207_p7  ;;  %s225_s11 = sshll.u32 %s1117_s10, 4  ;;  %s1209_s11 = int_to_ptr.vmem [resolvable:$true] %s225_s11 }
   0xe   : > { %s1118_s13 = smov [#allocation7]   ;;  %s959_s17 = scalar_lea.hbm %s1437_s3, 2048 }
   0xf   : > { %p892_p9 = pneg %p1205_p8  ;;  %s241_s14 = sshll.u32 %s1118_s13, 4  ;;  %s1220_s14 = int_to_ptr.vmem [resolvable:$true] %s241_s14 }
  0x10   : > { %p960_p12 = scmp.ne.s32.totalorder %s1437_s3, %s959_s17  ;;  %p966_p5 = scmp.lt.u32.totalorder %s959_s17, %s1437_s3 }
  0x11   : > { %p1216_p11 = pnand %p892_p9, %p1442_p1 }
  0x13   : > { %p961_p13 = pneg %p1216_p11 }
  0x15   : > { %p962_p0 = pnand %p961_p13, %p960_p12 }
  0x17   : > { %p963_p3 = pneg %p962_p0 }
  0x19   : > { %p968_p7 = pnand %p966_p5, %p963_p3 }
  0x1b   : > { %971 = shalt.err (!%p968_p7)
}
  0x1c   : > { %s972_s22 = scalar_lea.vmem %s1209_s11, 2048  ;;  %p980_p2 = scmp.lt.s32.totalorder %s1209_s11, %s1209_s11 }
  0x1d   : > { %p973_p9 = scmp.ne.s32.totalorder %s1209_s11, %s972_s22  ;;  %p981_p12 = scmp.lt.s32.totalorder %s972_s22, %s972_s22 }
  0x1f   : > { %p975_p10 = pnand %p973_p9, %p961_p13  ;;  %p982_p0 = por %p981_p12, %p980_p2 }
  0x21   : > { %p976_p1 = pneg %p975_p10 }
  0x23   : > { %p983_p6 = pnand %p982_p0, %p976_p1 }
  0x25   : > { %986 = shalt.err (!%p983_p6)
}
  0x26   : > { %s1443_s23 = smov 128   ;;  %s1120_s29 = smov 8  }
  0x27   : > { %895 = dma.hbm_to_vmem [thread:$0]  (!%p1216_p11), %s1437_s3, 2048, %s1209_s11, [#allocation6], %s1443_s23, %s1443_s23, %s1120_s29  }
  0x28   : > { %s987_s17 = scalar_lea.hbm %s1439_s5, 2048 }
  0x29   : > { %p988_p1 = scmp.ne.s32.totalorder %s1439_s5, %s987_s17  ;;  %p994_p10 = scmp.lt.u32.totalorder %s987_s17, %s1439_s5 }
  0x2b   : > { %p990_p2 = pnand %p988_p1, %p961_p13 }
  0x2d   : > { %p991_p6 = pneg %p990_p2 }
  0x2f   : > { %p996_p3 = pnand %p994_p10, %p991_p6 }
  0x31   : > { %999 = shalt.err (!%p996_p3)
}
  0x32   : > { %s1000_s11 = scalar_lea.vmem %s1220_s14, 2048  ;;  %p1008_p12 = scmp.lt.s32.totalorder %s1220_s14, %s1220_s14 }
  0x33   : > { %p1001_p5 = scmp.ne.s32.totalorder %s1220_s14, %s1000_s11  ;;  %p1009_p0 = scmp.lt.s32.totalorder %s1000_s11, %s1000_s11 }
  0x35   : > { %p1003_p7 = pnand %p1001_p5, %p961_p13  ;;  %p1010_p1 = por %p1009_p0, %p1008_p12 }
  0x37   : > { %p1004_p9 = pneg %p1003_p7 }
  0x39   : > { %p1011_p2 = pnand %p1010_p1, %p1004_p9 }
  0x3b   : > { %1014 = shalt.err (!%p1011_p2)
}
  0x3c   : > { %898 = dma.hbm_to_vmem [thread:$0]  (!%p1216_p11), %s1439_s5, 2048, %s1220_s14, [#allocation6], %s1443_s23, %s1443_s23, %s1120_s29  }
  0x3d   : > { %s1281_s12 = sadd.s32 1, %s1115_s27   ;;  %s31_s13 = sadd.s32 1, %s1111_s26 }
  0x3e   : > { %s28_s15 = ssub.s32 %s1115_s27, %s1281_s12  ;;  %p38_p13 = scmp.ne.s32.totalorder %s1111_s26, %s1107_s25 }
  0x3f   : > { %p29_p6 = scmp.eq.s32.totalorder %s28_s15, 0  ;;  %p39_p10 = scmp.eq.s32.totalorder %s1115_s27, 0 }
  0x40   : > { %p1450_p3 = scmp.eq.s32.totalorder %s1186_s28, 1  ;;  %p909_p7 = scmp.lt.s32.totalorder %s1115_s27, 2 }
  0x41   : > { %s1297_s17 = scalar_select %p29_p6, %s1111_s26, %s31_s13  }
  0x42   : > { %p1291_p5 = por %p1450_p3, %p38_p13  ;;  %p40_p9 = por %p39_p10, %p38_p13 }
  0x43   : > { %s258_s18 = sand.u32 1, %s1111_s26   ;;  %s708_s14 = sshll.u32 %s1115_s27, 8 }
  0x44   : > { %s1451_s16 = scalar_select %p1291_p5, 1, 0 }
  0x45   : > { %s691_s19 = sshll.u32 %s258_s18, 4  ;;  %s1304_s11 = scalar_lea.hbm %s1434_s0, %s708_s14 }
  0x46   : > { %s262_s22 = scalar_lea.vmem [#allocation2], %s691_s19  ;;  %p1308_p11 = pnand %p909_p7, %p40_p9 }
  0x47   : > { %s269_s10 = sshll.u32 %s262_s22, 4  ;;  %s1312_s15 = scalar_lea.sflag [#allocation3], %s258_s18  ;;  %s1306_s10 = int_to_ptr.vmem [resolvable:$true] %s269_s10 }
  0x48   : > { %s1015_s23 = scalar_lea.hbm %s1304_s11, 256  ;;  %p1017_p0 = pneg %p1308_p11 }
  0x49   : > { %p1016_p12 = scmp.ne.s32.totalorder %s1304_s11, %s1015_s23  ;;  %s1020_s20 = scalar_lea.hbm %s1434_s0, 512 }
  0x4a   : > { %p1021_p13 = scmp.lt.u32.totalorder %s1304_s11, %s1434_s0  ;;  %p1022_p6 = scmp.lt.u32.totalorder %s1020_s20, %s1015_s23 }
  0x4b   : > { %p1018_p1 = pnand %p1017_p0, %p1016_p12  ;;  %p1024_p3 = scmp.lt.u32.totalorder %s1015_s23, %s1304_s11 }
  0x4c   : > { %p1023_p10 = por %p1022_p6, %p1021_p13 }
  0x4d   : > { %p1019_p2 = pneg %p1018_p1 }
  0x4e   : > { %p1025_p7 = por %p1024_p3, %p1023_p10 }
  0x50   : > { %p1026_p9 = pnand %p1025_p7, %p1019_p2 }
  0x52   : > { %1029 = shalt.err (!%p1026_p9)
}
  0x53   : > { %s1030_s18 = scalar_lea.vmem %s1306_s10, 256  ;;  %s1121_s19 = smov [#allocation2]  }
  0x54   : > { %p1031_p12 = scmp.ne.s32.totalorder %s1306_s10, %s1030_s18  ;;  %s1035_s14 = sshll.u32 %s1121_s19, 4  ;;  %s1036_s14 = int_to_ptr.vmem [resolvable:$false] %s1035_s14 }
  0x55   : > { %s1037_s21 = scalar_lea.vmem %s1036_s14, 512  ;;  %p1038_p4 = scmp.lt.s32.totalorder %s1306_s10, %s1036_s14 }
  0x56   : > { %p1033_p1 = pnand %p1031_p12, %p1017_p0  ;;  %p1039_p13 = scmp.lt.s32.totalorder %s1037_s21, %s1030_s18 }
  0x58   : > { %p1034_p5 = pneg %p1033_p1  ;;  %p1040_p6 = por %p1039_p13, %p1038_p4 }
  0x5a   : > { %p1041_p10 = pnand %p1040_p6, %p1034_p5 }
  0x5c   : > { %1044 = shalt.err (!%p1041_p10)
}
  0x5d   : > { %s1453_s23 = smov 128   ;;  %281 = sbr.rel (%p1205_p8) target bundleno = 885 (0x375), region = 48 }
  0x5e   : > { %902 = dma.hbm_to_vmem [thread:$0]  (!%p1308_p11), %s1304_s11, 256, %s1306_s10, %s1312_s15, %s1453_s23, %s1453_s23, %s1120_s29  }
  0x5f   : > { %s1346_s20 = sand.u32 (!%p1205_p8), 1, %s1107_s25   ;;  %p1454_p4 = scmp.ne.s32.totalorder (!%p1205_p8), %s1446_s30, 0 }
  0x60   : > { %s695_s22 = sshll.u32 (!%p1205_p8), %s1346_s20, 4  ;;  %s284_s18 = scalar_lea.sflag (!%p1205_p8), [#allocation3], %s1346_s20 }
  0x61   : > { %s287_s13 = scalar_lea.vmem (!%p1205_p8), [#allocation2], %s695_s22 }
  0x64   : > { %1090 = dma.done.wait (%p1454_p4), %s284_s18, 256  }
  0x65   : > { %1092 = vsyncadd (%p1454_p4), %s284_s18, 4294967040  ;;  %p1455_p5 = scmp.eq.s32.totalorder %s1186_s28, 0 }
  0x67   : > { %1094 = dma.done.wait (%p1455_p5), [#allocation6], 4096   ;;  %p1456_p8 = pmov %p1455_p5 }
  0x68   : > { %v328_v0 = vld [vmem:[%s287_s13] sm:$0xff]  ;;  %v329_v1 = vld [vmem:[%s287_s13 + $0x8] sm:$0xff]  ;;  %s325_s21 = scalar_lea.vmem [#allocation8], %s695_s22  ;;  %s709_s18 = sshll.u32 %s1186_s28, 8 }
  0x69   : > { %1096 = vsyncadd (%p1456_p8), [#allocation6], 4294963200  ;;  %330 = vadd.xlane.f32.xlu0 %v328_v0  ;;  %v370_v2 = vld [vmem:[#allocation5] sm:$0xff]  ;;  %v371_v3 = vld [vmem:[#allocation5 + $0x8] sm:$0xff]  ;;  %s594_s23 = sshll.u32 %s325_s21, 4  ;;  %s1390_s9 = scalar_lea.hbm %s1441_s7, %s709_s18  ;;  %s1385_s23 = int_to_ptr.vmem [resolvable:$true] %s594_s23 }
  0x6a   : > { %v372_v4 = vld [vmem:[#allocation5 + $0x10] sm:$0xff]  ;;  %v816_v5 = vpack.c.bf16 %v371_v3, %v370_v2  ;;  %v373_v6 = vld [vmem:[#allocation5 + $0x18] sm:$0xff]  ;;  %v374_v16 = vld [vmem:[#allocation5 + $0x20] sm:$0xff]  ;;  %s581_s22 = scalar_lea.sflag [#allocation4], %s1346_s20  ;;  %s1045_s29 = scalar_lea.vmem %s1385_s23, 256 }
  0x6b   : > { %v820_v7 = vpack.c.bf16 %v373_v6, %v372_v4  ;;  %v375_v17 = vld [vmem:[#allocation5 + $0x28] sm:$0xff]  ;;  %v376_v19 = vld [vmem:[#allocation5 + $0x30] sm:$0xff]  ;;  %v377_v20 = vld [vmem:[#allocation5 + $0x38] sm:$0xff]  ;;  %p1046_p11 = scmp.ne.s32.totalorder %s1385_s23, %s1045_s29  ;;  %p1457_p0 = scmp.ne.s32.totalorder %s1451_s16, 0 }
  0x6c   : > { %817 = vmatprep.subr.bf16.mxu0 %v816_v5  ;;  %v824_v18 = vpack.c.bf16 %v375_v17, %v374_v16  ;;  %v828_v21 = vpack.c.bf16 %v377_v20, %v376_v19  ;;  %v378_v22 = vld [vmem:[#allocation5 + $0x40] sm:$0xff]  ;;  %v379_v23 = vld [vmem:[#allocation5 + $0x48] sm:$0xff]  ;;  %v380_v25 = vld [vmem:[#allocation5 + $0x50] sm:$0xff]  ;;  %s1122_s28 = smov [#allocation8]  }
  0x6d   : > { %332 = vadd.xlane.f32.xlu0 %v329_v1  ;;  %819 = vmatpush3.bf16.msra.mxu0 %v816_v5  ;;  %v832_v24 = vpack.c.bf16 %v379_v23, %v378_v22  ;;  %v381_v26 = vld [vmem:[#allocation5 + $0x58] sm:$0xff]  ;;  %v382_v27 = vld [vmem:[#allocation5 + $0x60] sm:$0xff]  ;;  %v383_v29 = vld [vmem:[#allocation5 + $0x68] sm:$0xff]  ;;  %p1047_p2 = pnand %p1046_p11, %p1457_p0  ;;  %s1049_s11 = sshll.u32 %s1122_s28, 4  ;;  %s1050_s11 = int_to_ptr.vmem [resolvable:$false] %s1049_s11 }
  0x6e   : > { %821 = vmatprep.subr.bf16.mxu0 %v820_v7  ;;  %v836_v28 = vpack.c.bf16 %v381_v26, %v380_v25  ;;  %v840_v30 = vpack.c.bf16 %v383_v29, %v382_v27  ;;  %v384_v31 = vld [vmem:[#allocation5 + $0x70] sm:$0xff]  ;;  %v385_v32 = vld [vmem:[#allocation5 + $0x78] sm:$0xff]  ;;  %v478_v34 = vld [vmem:[#allocation7] sm:$0xff]  ;;  %s1051_s10 = scalar_lea.vmem %s1050_s11, 512  ;;  %p1052_p7 = scmp.lt.s32.totalorder %s1385_s23, %s1050_s11 }
  0x6f   : > { %v844_v33 = vpack.c.bf16 %v385_v32, %v384_v31  ;;  %v479_v35 = vld [vmem:[#allocation7 + $0x8] sm:$0xff]  ;;  %v480_v36 = vld [vmem:[#allocation7 + $0x10] sm:$0xff]  ;;  %v481_v38 = vld [vmem:[#allocation7 + $0x18] sm:$0xff]  ;;  %p1048_p3 = pneg %p1047_p2  ;;  %p1053_p9 = scmp.lt.s32.totalorder %s1051_s10, %s1045_s29 }
  0x70   : > { %v848_v37 = vpack.c.bf16 %v479_v35, %v478_v34  ;;  %v852_v39 = vpack.c.bf16 %v481_v38, %v480_v36  ;;  %v482_v40 = vld [vmem:[#allocation7 + $0x20] sm:$0xff]  ;;  %v483_v41 = vld [vmem:[#allocation7 + $0x28] sm:$0xff]  ;;  %v484_v59 = vld [vmem:[#allocation7 + $0x30] sm:$0xff] }
  0x71   : > { %823 = vmatpush3.bf16.msra.mxu0 %v820_v7  ;;  %v856_v42 = vpack.c.bf16 %v483_v41, %v482_v40  ;;  %v699_v49 = vld [vmem:[%s1435_s1] ss:$0 sm:$0xff]  ;;  %v485_v60 = vld [vmem:[#allocation7 + $0x38] sm:$0xff]  ;;  %v487_v63 = vld [vmem:[#allocation7 + $0x48] sm:$0xff]  ;;  %p1054_p12 = por %p1053_p9, %p1052_p7 }
  0x72   : > { %825 = vmatprep.subr.bf16.mxu0 %v824_v18  ;;  %849 = vmatprep.subr.bf16.mxu1 %v848_v37  ;;  %v700_v52 = vld [vmem:[%s1436_s2] ss:$0 sm:$0xff]  ;;  %v860_v61 = vpack.c.bf16 %v485_v60, %v484_v59  ;;  %v489_v2 = vld [vmem:[#allocation7 + $0x58] sm:$0xff]  ;;  %v491_v5 = vld [vmem:[#allocation7 + $0x68] sm:$0xff] }
  0x73   : > { %851 = vmatpush3.bf16.msra.mxu1 %v848_v37  ;;  %v486_v62 = vld [vmem:[#allocation7 + $0x40] sm:$0xff]  ;;  %v492_v7 = vld [vmem:[#allocation7 + $0x70] sm:$0xff]  ;;  %p1055_p1 = pnand %p1054_p12, %p1048_p3 }
  0x74   : > { %853 = vmatprep.subr.bf16.mxu1 %v852_v39  ;;  %v490_v4 = vld [vmem:[#allocation7 + $0x60] sm:$0xff] }
  0x75   : > { %827 = vmatpush3.bf16.msra.mxu0 %v824_v18  ;;  %v872_v6 = vpack.c.bf16 %v491_v5, %v490_v4  ;;  %v702_v25 = vld [vmem:[%s1440_s6] ss:$0 sm:$0xff] }
  0x76   : > { %829 = vmatprep.subr.bf16.mxu0 %v828_v21 }
  0x77   : > { %855 = vmatpush3.bf16.msra.mxu1 %v852_v39 }
  0x78   : > { %857 = vmatprep.subr.bf16.mxu1 %v856_v42 }
  0x79   : > { %831 = vmatpush3.bf16.msra.mxu0 %v828_v21 }
  0x7a   : > { %833 = vmatprep.subr.bf16.mxu0 %v832_v24 }
  0x7b   : > { %859 = vmatpush3.bf16.msra.mxu1 %v856_v42 }
  0x7c   : > { %861 = vmatprep.subr.bf16.mxu1 %v860_v61 }
  0x7d   : > { %835 = vmatpush3.bf16.msra.mxu0 %v832_v24 }
  0x7e   : > { %837 = vmatprep.subr.bf16.mxu0 %v836_v28 }
  0x7f   : > { %863 = vmatpush3.bf16.msra.mxu1 %v860_v61 }
  0x81   : > { %839 = vmatpush3.bf16.msra.mxu0 %v836_v28 }
  0x82   : > { %841 = vmatprep.subr.bf16.mxu0 %v840_v30 }
  0x85   : > { %843 = vmatpush3.bf16.msra.mxu0 %v840_v30 }
  0x86   : > { %845 = vmatprep.subr.bf16.mxu0 %v844_v33 }
  0x89   : > { %847 = vmatpush3.bf16.msra.mxu0 %v844_v33 }
  0xf6   : > { %v331_v8 = vpop.xlane.xlu0 %330 }
  0xf7   : > { %v334_v9 = vmul.f32 0.0078125, %v331_v8  ;;  %v493_v8 = vld [vmem:[#allocation7 + $0x78] sm:$0xff] }
  0xf9   : > { %v1360_v10 = vsub.f32 %v328_v0, %v334_v9  ;;  %v864_v0 = vpack.c.bf16 %v487_v63, %v486_v62  ;;  %v876_v9 = vpack.c.bf16 %v493_v8, %v492_v7 }
  0xfa   : > { %v333_v11 = vpop.xlane.xlu0 %332 }
  0xfb   : > { %v335_v12 = vmul.f32 0.0078125, %v333_v11  ;;  %v338_v13 = vmul.f32 %v1360_v10, %v1360_v10  ;;  %865 = vmatprep.subr.bf16.mxu1 %v864_v0 }
  0xfc   : > { %867 = vmatpush3.bf16.msra.mxu1 %v864_v0 }
  0xfd   : > { %v1364_v14 = vsub.f32 %v329_v1, %v335_v12  ;;  %340 = vadd.xlane.f32.xlu1 %v338_v13  ;;  %v488_v1 = vld [vmem:[#allocation7 + $0x50] sm:$0xff] }
  0xfe   : > { %v868_v3 = vpack.c.bf16 %v489_v2, %v488_v1 }
  0xff   : > { %v339_v15 = vmul.f32 %v1364_v14, %v1364_v14 }
 0x100   : > { %869 = vmatprep.subr.bf16.mxu1 %v868_v3 }
 0x101   : > { %342 = vadd.xlane.f32.xlu1 %v339_v15  ;;  %871 = vmatpush3.bf16.msra.mxu1 %v868_v3 }
 0x102   : > { %873 = vmatprep.subr.bf16.mxu1 %v872_v6 }
 0x105   : > { %875 = vmatpush3.bf16.msra.mxu1 %v872_v6 }
 0x106   : > { %877 = vmatprep.subr.bf16.mxu1 %v876_v9 }
 0x109   : > { %879 = vmatpush3.bf16.msra.mxu1 %v876_v9 }
 0x18a   : > { %v341_v43 = vpop.xlane.xlu1 %340 }
 0x18b   : > { %v344_v44 = vmul.f32 0.0078125, %v341_v43 }
 0x18d   : > { %v347_v45 = vadd.f32 1e-05, %v344_v44 }
 0x18e   : > { %v343_v46 = vpop.xlane.xlu1 %342 }
 0x18f   : > { %951 = vrsqrt.f32 %v347_v45  ;;  %v345_v47 = vmul.f32 0.0078125, %v343_v46 }
 0x191   : > { %v348_v48 = vadd.f32 1e-05, %v345_v47 }
 0x193   : > { %953 = vrsqrt.f32 %v348_v48 }
 0x199   : > { %v952_v50 = vpop.eup %951 }
 0x19a   : > { %v357_v51 = vmul.f32 %v952_v50, %v699_v49 }
 0x19c   : > { %v359_v53 = vmul.f32 %v357_v51, %v1360_v10  ;;  %v701_v10 = vld [vmem:[%s1438_s4] ss:$0 sm:$0xff] }
 0x19d   : > { %v954_v54 = vpop.eup %953 }
 0x19e   : > { %v358_v55 = vmul.f32 %v954_v54, %v699_v49  ;;  %v368_v56 = vadd.f32 %v700_v52, %v359_v53 }
 0x1a0   : > { %v360_v57 = vmul.f32 %v358_v55, %v1364_v14  ;;  %778 = vmatprep.mubr.f32.mxu0 %v368_v56 }
 0x1a2   : > { %v369_v58 = vadd.f32 %v700_v52, %v360_v57 }
 0x1a4   : > { %779 = vmatmul.mubr.f32.vlgmr.msra.gmra.mrb[0].mxu0 %v369_v58 }
 0x277   : > { %v780_v11 = vpop.f32.mrb[0].mxu0 }
 0x278   : > { %v465_v12 = vadd.f32 %v780_v11, %v701_v10  ;;  %v459_v13 = vpop.f32.mrb[1].mxu0 }
 0x279   : > { %v460_v14 = vadd.f32 %v701_v10, %v459_v13 }
 0x27a   : > { %v471_v15 = vmul.f32 0.70710677, %v465_v12  ;;  %v469_v22 = vmul.f32 0.5, %v465_v12 }
 0x27b   : > { %v470_v16 = vmul.f32 0.70710677, %v460_v14  ;;  %v468_v20 = vmul.f32 0.5, %v460_v14 }
 0x27c   : > { %955 = verf.f32 %v471_v15 }
 0x27d   : > { %957 = verf.f32 %v470_v16 }
 0x286   : > { %v956_v17 = vpop.eup %955 }
 0x287   : > { %v958_v18 = vpop.eup %957  ;;  %v475_v19 = vadd.f32 1.0, %v956_v17 }
 0x288   : > { %v474_v21 = vadd.f32 1.0, %v958_v18 }
 0x289   : > { %v477_v24 = vmul.f32 %v475_v19, %v469_v22 }
 0x28a   : > { %v476_v23 = vmul.f32 %v474_v21, %v468_v20 }
 0x28c   : > { %813 = vmatprep.mubr.f32.mxu1 %v476_v23 }
 0x28d   : > { %814 = vmatmul.mubr.f32.vlgmr.msra.gmra.mrb[0].mxu1 %v477_v24 }
 0x360   : > { %v815_v26 = vpop.f32.mrb[0].mxu1 }
 0x361   : > { %v573_v27 = vadd.f32 %v815_v26, %v702_v25  ;;  %v567_v28 = vpop.f32.mrb[1].mxu1 }
 0x362   : > { %v568_v29 = vadd.f32 %v702_v25, %v567_v28 }
 0x363   : > { %v577_v30 = vadd.f32 %v573_v27, %v369_v58 }
 0x364   : > { %v576_v31 = vadd.f32 %v568_v29, %v368_v56 }
 0x365   : > { %579 = vst [vmem:[%s325_s21 + $0x8] sm:$0xff] %v577_v30 }
 0x366   : > { %578 = vst [vmem:[%s325_s21] sm:$0xff] %v576_v31 }
 0x367   : > { %1058 = shalt.err (!%p1055_p1)
}
 0x368   : > { %s1059_s15 = scalar_lea.hbm %s1390_s9, 256  ;;  %s1063_s21 = scalar_lea.hbm %s1441_s7, 512 }
 0x369   : > { %p1060_p13 = scmp.ne.s32.totalorder %s1390_s9, %s1059_s15  ;;  %p1064_p4 = scmp.lt.u32.totalorder %s1390_s9, %s1441_s7 }
 0x36a   : > { %p1065_p5 = scmp.lt.u32.totalorder %s1063_s21, %s1059_s15  ;;  %p1067_p11 = scmp.lt.u32.totalorder %s1059_s15, %s1390_s9 }
 0x36b   : > { %p1061_p6 = pnand %p1060_p13, %p1457_p0 }
 0x36c   : > { %p1066_p8 = por %p1065_p5, %p1064_p4 }
 0x36d   : > { %p1062_p10 = pneg %p1061_p6 }
 0x36e   : > { %p1068_p2 = por %p1067_p11, %p1066_p8 }
 0x370   : > { %p1069_p3 = pnand %p1068_p2, %p1062_p10 }
 0x372   : > { %1072 = shalt.err (!%p1069_p3)
}
 0x373   : > { %s1123_s30 = smov 128   ;;  %s1124_s29 = smov 8  }
 0x374   : > { %890 = dma.vmem_to_hbm [thread:$0]  (%p1457_p0), %s1385_s23, 256, %s1390_s9, %s581_s22, %s1123_s30, %s1123_s30, %s1124_s29  }
 0x375 PF: > { %s609_s28 = sand.u32 1, %s1103_s24   ;;  %p1458_p7 = scmp.ne.s32.totalorder %s1447_s8, 0 }
 0x376   : > { %p1459_p9 = scmp.ge.s32.totalorder %s1115_s27, 2  ;;  %s610_s11 = scalar_lea.sflag [#allocation4], %s609_s28 }
 0x378   : > { %p904_p12 = pnand %p1459_p9, %p1458_p7 }
 0x37a   : > { %1098 = dma.done.wait (!%p904_p12), %s610_s11, 256  }
 0x37b   : > { %1100 = vsyncadd (!%p904_p12), %s610_s11, 4294967040  ;;  %p21_p1 = scmp.ge.s32.totalorder %s1281_s12, 4   ;;  %s1460_s24 = smov %s1107_s25 }
 0x37c   : > { %s1461_s25 = smov %s1111_s26  ;;  %s1462_s26 = smov %s1297_s17 }
 0x37d   : > { %s1463_s27 = smov %s1281_s12  ;;  %23 = sbr.rel (!%p21_p1) target bundleno = 6 (0x6), region = 101 }
 0x384   :  { %615 = vsyncpa [#allocation3], 1 }
 0x385   :  { %617 = vsyncpa [#allocation3 + $0x1], 1 }
 0x386   :  { %618 = vsyncpa [#allocation6], 1 }
 0x387   :  { %619 = vsyncpa [#allocation4], 1 }
 0x388   :  { %621 = vsyncpa [#allocation4 + $0x1], 1 }

</bundles_post_ra>
